<compile_context>
chip_gen: v7x
topology: tpu7x:2x2x1
jax: 0.10.0
libtpu: 0.0.40
codegen_flags: <defaults>
</compile_context>

<pallas_src>
import jax
import jax.numpy as jnp
from jax.experimental import pallas as pl
from jax.experimental.pallas import tpu as pltpu

LANE = 128      # TPU lane width
HID1 = 128      # first GCN layer width (fixed by the module)


def _round_up(x, m):
    return ((x + m - 1) // m) * m


def _vmem_limit_bytes():
    """Scoped VMEM limit: ~60% of physical, falling back to the v7x worst case."""
    try:
        cap = int(pltpu.get_tpu_info().vmem_capacity_bytes)
    except Exception:
        cap = 64 * 1024 * 1024          # assume v7x (smallest VMEM per TC)
    return max(32 * 1024 * 1024, min(int(cap * 0.6), 100 * 1024 * 1024))


def _tiled_footprint(t, f_pad, hp):
    """Rough per-step VMEM bytes for the K-tiled kernels (worst of the two)."""
    a_dbl = 2 * t * t                       # int8 A tile, double-buffered
    a_cast = 6 * t * t                      # f32 + bf16 upcast temporaries
    rhs = 2 * t * max(f_pad, hp) * 2        # bf16 RHS tile, double-buffered
    acc = t * max(f_pad, hp) * 4            # f32 accumulator scratch
    outs = 2 * t * hp * 4                   # output tile (f32 worst case), dbl-buffered
    drow = 2 * t * LANE * 4                 # (t,1) f32 block, lane-padded layout
    weights = 2 * (f_pad * HID1 + HID1 * hp + hp + HID1) * 4
    return a_dbl + a_cast + rhs + acc + outs + drow + weights


def _choose_tile(n, f_pad, hp, vmem_limit):
    budget = int(vmem_limit * 0.6)          # leave headroom for Mosaic scratch
    t = 512 if n > 2048 else 256
    while t > 128 and _tiled_footprint(t, f_pad, hp) > budget:
        t //= 2
    return max(t, 128)


# --------------------------------------------------------------------------- #
# Fused single-call path (A resident in VMEM; for small graphs)
# --------------------------------------------------------------------------- #
def _fused_gcn_kernel(a_ref, xs_ref, dinv_ref, w1_ref, b1_ref, w2_ref, b2_ref,
                      o_ref):
    # int8 -> bf16 upcast on the VPU (hidden under the A DMA); reused for both layers.
    a = a_ref[...].astype(jnp.float32).astype(jnp.bfloat16)
    dinv = dinv_ref[...]
    # layer 1: A @ (D^-1/2 x) kept F-wide, then row scale, @W1, +b1, relu
    ax = jnp.dot(a, xs_ref[...], preferred_element_type=jnp.float32)
    h = jnp.dot((ax * dinv).astype(jnp.bfloat16), w1_ref[...],
                preferred_element_type=jnp.float32)
    h = jnp.maximum(h + b1_ref[...], 0.0)
    # layer 2: feature transform, column scale, propagate, row scale, +b2
    g = jnp.dot(h.astype(jnp.bfloat16), w2_ref[...],
                preferred_element_type=jnp.float32)
    gs = (g * dinv).astype(jnp.bfloat16)
    ag = jnp.dot(a, gs, preferred_element_type=jnp.float32)
    o_ref[...] = (ag * dinv + b2_ref[...]).astype(o_ref.dtype)


# --------------------------------------------------------------------------- #
# K-tiled kernel 1:  g = ( relu( D^-1/2 (A+I) (D^-1/2 x) @ W1 + b1 ) @ W2 ) * D^-1/2
# --------------------------------------------------------------------------- #
def _gcn_layer1_kernel(a_ref, xs_ref, drow_ref, w1_ref, b1_ref, w2_ref,
                       g_ref, acc_ref):
    k = pl.program_id(1)

    @pl.when(k == 0)
    def _():
        acc_ref[...] = jnp.zeros_like(acc_ref)

    a = a_ref[...].astype(jnp.float32).astype(jnp.bfloat16)
    acc_ref[...] += jnp.dot(a, xs_ref[...], preferred_element_type=jnp.float32)

    @pl.when(k == pl.num_programs(1) - 1)
    def _():
        ax = acc_ref[...] * drow_ref[...]                     # row normalization
        h = jnp.dot(ax.astype(jnp.bfloat16), w1_ref[...],
                    preferred_element_type=jnp.float32)
        h = jnp.maximum(h + b1_ref[...], 0.0)                 # relu(GCNConv1)
        g = jnp.dot(h.astype(jnp.bfloat16), w2_ref[...],
                    preferred_element_type=jnp.float32)
        # fold layer-2's COLUMN normalization into the stored intermediate
        g_ref[...] = (g * drow_ref[...]).astype(g_ref.dtype)


# --------------------------------------------------------------------------- #
# K-tiled kernel 2:  out = D^-1/2 (A+I) g + b2        (g already column-scaled)
# --------------------------------------------------------------------------- #
def _gcn_layer2_kernel(a_ref, gs_ref, drow_ref, b2_ref, o_ref, acc_ref):
    k = pl.program_id(1)

    @pl.when(k == 0)
    def _():
        acc_ref[...] = jnp.zeros_like(acc_ref)

    a = a_ref[...].astype(jnp.float32).astype(jnp.bfloat16)
    acc_ref[...] += jnp.dot(a, gs_ref[...], preferred_element_type=jnp.float32)

    @pl.when(k == pl.num_programs(1) - 1)
    def _():
        o_ref[...] = (acc_ref[...] * drow_ref[...] + b2_ref[...]).astype(o_ref.dtype)


def gcl_gcn_forward(x, edge_index, w1, b1, w2, b2, *, max_fused_nodes=2048,
                    tile=None):
    """x: [N, F] float32, edge_index: [2, E] int32. Returns [N, hidden_dim] f32."""
    n, f = x.shape
    hidden = w2.shape[1]
    f_pad = _round_up(f, LANE)
    hp = _round_up(hidden, LANE)
    vmem_limit = _vmem_limit_bytes()

    # ---- graph glue: O(E) degree + single int8 scatter into a pre-padded buffer ----
    src = edge_index[0].astype(jnp.int32)
    dst = edge_index[1].astype(jnp.int32)
    loop = jnp.arange(n, dtype=jnp.int32)
    src_all = jnp.concatenate([src, loop])                   # self-loops appended
    dst_all = jnp.concatenate([dst, loop])
    deg = jax.ops.segment_sum(jnp.ones(src_all.shape[0], jnp.float32), dst_all,
                              num_segments=n)
    dinv = jnp.where(deg > 0, jax.lax.rsqrt(deg), 0.0)

    use_fused = (tile is None) and (_round_up(n, LANE) <= max_fused_nodes)
    if use_fused:
        t = None
        n_pad = _round_up(n, LANE)
    else:
        t = tile if tile is not None else _choose_tile(n, f_pad, hp, vmem_limit)
        n_pad = _round_up(n, t)
    pad_n = n_pad - n

    # (A + I) as int8, scattered directly into the padded buffer (exact edge counts).
    adj = jnp.zeros((n_pad, n_pad), jnp.int8).at[dst_all, src_all].add(
        jnp.ones_like(src_all, jnp.int8))
    # x pre-scaled by D^-1/2 once (column normalization of layer 1), lane-padded bf16.
    xs_p = jnp.pad(x * dinv[:, None], ((0, pad_n), (0, f_pad - f))).astype(jnp.bfloat16)
    dinv_p = jnp.pad(dinv, (0, pad_n)).reshape(n_pad, 1).astype(jnp.float32)
    w1_p = jnp.pad(w1, ((0, f_pad - f), (0, 0))).astype(jnp.bfloat16)
    b1_r = jnp.reshape(b1, (1, HID1)).astype(jnp.float32)
    w2_p = jnp.pad(w2, ((0, 0), (0, hp - hidden))).astype(jnp.bfloat16)
    b2_p = jnp.pad(jnp.reshape(b2, (1, hidden)),
                   ((0, 0), (0, hp - hidden))).astype(jnp.float32)

    # ---------------- fused path: A resident, one HBM pass, no HBM intermediate ----
    if use_fused:
        out_p = pl.pallas_call(
            _fused_gcn_kernel,
            out_shape=jax.ShapeDtypeStruct((n_pad, hp), jnp.float32),
            compiler_params=pltpu.CompilerParams(vmem_limit_bytes=vmem_limit),
        )(adj, xs_p, dinv_p, w1_p, b1_r, w2_p, b2_p)
        return out_p[:n, :hidden]

    # ---------------- K-tiled path ----------------
    grid = (n_pad // t, n_pad // t)
    cparams = pltpu.CompilerParams(
        dimension_semantics=("parallel", "arbitrary"),   # rows megacore-shard, K last
        vmem_limit_bytes=vmem_limit,
    )

    g = pl.pallas_call(
        _gcn_layer1_kernel,
        out_shape=jax.ShapeDtypeStruct((n_pad, hp), jnp.bfloat16),
        grid=grid,
        in_specs=[
            pl.BlockSpec((t, t), lambda i, k: (i, k)),         # A tile (int8)
            pl.BlockSpec((t, f_pad), lambda i, k: (k, 0)),     # D^-1/2 x (bf16)
            pl.BlockSpec((t, 1), lambda i, k: (i, 0)),         # D^-1/2 rows
            pl.BlockSpec((f_pad, HID1), lambda i, k: (0, 0)),  # W1
            pl.BlockSpec((1, HID1), lambda i, k: (0, 0)),      # b1
            pl.BlockSpec((HID1, hp), lambda i, k: (0, 0)),     # W2 (lane-padded)
        ],
        out_specs=pl.BlockSpec((t, hp), lambda i, k: (i, 0)),
        scratch_shapes=[pltpu.VMEM((t, f_pad), jnp.float32)],
        compiler_params=cparams,
        cost_estimate=pl.CostEstimate(
            flops=2 * (n_pad * n_pad * f_pad + n_pad * f_pad * HID1
                       + n_pad * HID1 * hp),
            transcendentals=0,
            bytes_accessed=n_pad * n_pad + 2 * n_pad * (f_pad + hp)
                           + 2 * (f_pad * HID1 + HID1 * hp)),
    )(adj, xs_p, dinv_p, w1_p, b1_r, w2_p)

    out_p = pl.pallas_call(
        _gcn_layer2_kernel,
        out_shape=jax.ShapeDtypeStruct((n_pad, hp), jnp.float32),
        grid=grid,
        in_specs=[
            pl.BlockSpec((t, t), lambda i, k: (i, k)),     # A tile (int8)
            pl.BlockSpec((t, hp), lambda i, k: (k, 0)),    # g (already column-scaled)
            pl.BlockSpec((t, 1), lambda i, k: (i, 0)),     # D^-1/2 rows
            pl.BlockSpec((1, hp), lambda i, k: (0, 0)),    # b2 (lane-padded)
        ],
        out_specs=pl.BlockSpec((t, hp), lambda i, k: (i, 0)),
        scratch_shapes=[pltpu.VMEM((t, hp), jnp.float32)],
        compiler_params=cparams,
        cost_estimate=pl.CostEstimate(
            flops=2 * n_pad * n_pad * hp,
            transcendentals=0,
            bytes_accessed=n_pad * n_pad + 2 * n_pad * hp + 4 * n_pad * hp),
    )(adj, g, dinv_p, b2_p)

    return out_p[:n, :hidden]


def init_params(key, feature_dim, hidden_dim):
    """Deterministic glorot-style init; biases zero (GCNConv defaults)."""
    k1, k2 = jax.random.split(key)
    s1 = jnp.sqrt(6.0 / (feature_dim + HID1))
    s2 = jnp.sqrt(6.0 / (HID1 + hidden_dim))
    w1 = jax.random.uniform(k1, (feature_dim, HID1), jnp.float32, -s1, s1)
    w2 = jax.random.uniform(k2, (HID1, hidden_dim), jnp.float32, -s2, s2)
    b1 = jnp.zeros((HID1,), jnp.float32)
    b2 = jnp.zeros((hidden_dim,), jnp.float32)
    return w1, b1, w2, b2


def _reference(x, edge_index, w1, b1, w2, b2):
    """Pure-f32 reference of the same GCN math."""
    n = x.shape[0]
    adj = jnp.zeros((n, n), jnp.float32).at[edge_index[1], edge_index[0]].add(1.0)
    adj = adj + jnp.eye(n, dtype=jnp.float32)
    dinv = 1.0 / jnp.sqrt(jnp.sum(adj, axis=1))
    a_hat = dinv[:, None] * adj * dinv[None, :]
    h = jnp.maximum(a_hat @ (x @ w1) + jnp.reshape(b1, (1, -1)), 0.0)
    return a_hat @ (h @ w2) + jnp.reshape(b2, (1, -1))


if __name__ == "__main__":
    key = jax.random.PRNGKey(0)
    k_x, k_src, k_dst, k_p, k_x2, k_s2, k_d2 = jax.random.split(key, 7)

    # ---- test 1: small graph (fused resident-A path) ----
    num_nodes, feature_dim, hidden_dim, num_edges = 16, 16, 32, 32
    x = jax.random.normal(k_x, (num_nodes, feature_dim), jnp.float32)
    edge_index = jnp.stack(
        [jax.random.randint(k_src, (num_edges,), 0, num_nodes, jnp.int32),
         jax.random.randint(k_dst, (num_edges,), 0, num_nodes, jnp.int32)], axis=0)
    w1, b1, w2, b2 = init_params(k_p, feature_dim, hidden_dim)

    out = jax.block_until_ready(gcl_gcn_forward(x, edge_index, w1, b1, w2, b2))
    ref = _reference(x, edge_index, w1, b1, w2, b2)
    assert out.shape == ref.shape, (out.shape, ref.shape)
    assert jnp.allclose(out, ref, atol=5e-2, rtol=5e-2), "fused path mismatch"

    # ---- test 2: force the K-tiled two-kernel path (multi-step accumulation) ----
    n2, e2 = 300, 900
    x2 = jax.random.normal(k_x2, (n2, feature_dim), jnp.float32)
    ei2 = jnp.stack(
        [jax.random.randint(k_s2, (e2,), 0, n2, jnp.int32),
         jax.random.randint(k_d2, (e2,), 0, n2, jnp.int32)], axis=0)
    out2 = jax.block_until_ready(
        gcl_gcn_forward(x2, ei2, w1, b1, w2, b2, max_fused_nodes=0, tile=128))
    ref2 = _reference(x2, ei2, w1, b1, w2, b2)
    assert out2.shape == ref2.shape, (out2.shape, ref2.shape)
    assert jnp.allclose(out2, ref2, atol=5e-2, rtol=5e-2), "tiled path mismatch"

    print("KERNEL_OK")
</pallas_src>

<mosaic_0001>
module attributes {stable_mosaic.version = 11 : i64} {
  func.func @_fused_gcn_kernel(%arg0: memref<128x128xi8, #tpu.memory_space<vmem>>, %arg1: memref<128x128xbf16, #tpu.memory_space<vmem>>, %arg2: memref<128x1xf32, #tpu.memory_space<vmem>>, %arg3: memref<128x128xbf16, #tpu.memory_space<vmem>>, %arg4: memref<1x128xf32, #tpu.memory_space<vmem>>, %arg5: memref<128x128xbf16, #tpu.memory_space<vmem>>, %arg6: memref<1x128xf32, #tpu.memory_space<vmem>>, %arg7: memref<128x128xf32, #tpu.memory_space<vmem>>) attributes {dimension_semantics = [], scalar_prefetch = 0 : i64, scratch_operands = 0 : i64, tpu.core_type = #tpu.core_type<tc>} {
    %c0 = arith.constant 0 : index
    %c0_0 = arith.constant 0 : index
    %0 = vector.load %arg0[%c0, %c0_0] : memref<128x128xi8, #tpu.memory_space<vmem>>, vector<128x128xi8>
    %1 = arith.sitofp %0 : vector<128x128xi8> to vector<128x128xf32>
    %2 = arith.truncf %1 : vector<128x128xf32> to vector<128x128xbf16>
    %c0_1 = arith.constant 0 : index
    %c0_2 = arith.constant 0 : index
    %3 = vector.load %arg2[%c0_1, %c0_2] : memref<128x1xf32, #tpu.memory_space<vmem>>, vector<128x1xf32>
    %c0_3 = arith.constant 0 : index
    %c0_4 = arith.constant 0 : index
    %4 = vector.load %arg1[%c0_3, %c0_4] : memref<128x128xbf16, #tpu.memory_space<vmem>>, vector<128x128xbf16>
    %cst = arith.constant dense<0.000000e+00> : vector<128x128xf32>
    %5 = tpu.matmul %2, %4, %cst {dimension_numbers = #tpu.dot_dimension_numbers<[1], [0], [0], [1], [0, 0, 1, 1], [], []>} : vector<128x128xbf16>, vector<128x128xbf16>, vector<128x128xf32> -> vector<128x128xf32>
    %6 = vector.broadcast %3 : vector<128x1xf32> to vector<128x128xf32>
    %7 = arith.mulf %5, %6 : vector<128x128xf32>
    %8 = arith.truncf %7 : vector<128x128xf32> to vector<128x128xbf16>
    %c0_5 = arith.constant 0 : index
    %c0_6 = arith.constant 0 : index
    %9 = vector.load %arg3[%c0_5, %c0_6] : memref<128x128xbf16, #tpu.memory_space<vmem>>, vector<128x128xbf16>
    %cst_7 = arith.constant dense<0.000000e+00> : vector<128x128xf32>
    %10 = tpu.matmul %8, %9, %cst_7 {dimension_numbers = #tpu.dot_dimension_numbers<[1], [0], [0], [1], [0, 0, 1, 1], [], []>} : vector<128x128xbf16>, vector<128x128xbf16>, vector<128x128xf32> -> vector<128x128xf32>
    %c0_8 = arith.constant 0 : index
    %c0_9 = arith.constant 0 : index
    %11 = vector.load %arg4[%c0_8, %c0_9] : memref<1x128xf32, #tpu.memory_space<vmem>>, vector<1x128xf32>
    %12 = vector.broadcast %11 : vector<1x128xf32> to vector<128x128xf32>
    %13 = arith.addf %10, %12 : vector<128x128xf32>
    %cst_10 = arith.constant 0.000000e+00 : f32
    %14 = vector.broadcast %cst_10 : f32 to vector<128x128xf32>
    %15 = arith.maximumf %13, %14 : vector<128x128xf32>
    %16 = arith.truncf %15 : vector<128x128xf32> to vector<128x128xbf16>
    %c0_11 = arith.constant 0 : index
    %c0_12 = arith.constant 0 : index
    %17 = vector.load %arg5[%c0_11, %c0_12] : memref<128x128xbf16, #tpu.memory_space<vmem>>, vector<128x128xbf16>
    %cst_13 = arith.constant dense<0.000000e+00> : vector<128x128xf32>
    %18 = tpu.matmul %16, %17, %cst_13 {dimension_numbers = #tpu.dot_dimension_numbers<[1], [0], [0], [1], [0, 0, 1, 1], [], []>} : vector<128x128xbf16>, vector<128x128xbf16>, vector<128x128xf32> -> vector<128x128xf32>
    %19 = vector.broadcast %3 : vector<128x1xf32> to vector<128x128xf32>
    %20 = arith.mulf %18, %19 : vector<128x128xf32>
    %21 = arith.truncf %20 : vector<128x128xf32> to vector<128x128xbf16>
    %cst_14 = arith.constant dense<0.000000e+00> : vector<128x128xf32>
    %22 = tpu.matmul %2, %21, %cst_14 {dimension_numbers = #tpu.dot_dimension_numbers<[1], [0], [0], [1], [0, 0, 1, 1], [], []>} : vector<128x128xbf16>, vector<128x128xbf16>, vector<128x128xf32> -> vector<128x128xf32>
    %23 = vector.broadcast %3 : vector<128x1xf32> to vector<128x128xf32>
    %24 = arith.mulf %22, %23 : vector<128x128xf32>
    %c0_15 = arith.constant 0 : index
    %c0_16 = arith.constant 0 : index
    %25 = vector.load %arg6[%c0_15, %c0_16] : memref<1x128xf32, #tpu.memory_space<vmem>>, vector<1x128xf32>
    %26 = vector.broadcast %25 : vector<1x128xf32> to vector<128x128xf32>
    %27 = arith.addf %24, %26 : vector<128x128xf32>
    %c0_17 = arith.constant 0 : index
    %c0_18 = arith.constant 0 : index
    %28 = vector.load %arg7[%c0_17, %c0_18] : memref<128x128xf32, #tpu.memory_space<vmem>>, vector<128x128xf32>
    tpu.vector_store %arg7[%c0_17, %c0_18], %27 {strides = array<i32>} : memref<128x128xf32, #tpu.memory_space<vmem>>, vector<128x128xf32>,
    return
  }
}

</mosaic_0001>

<bundles_post_ra>
// kernel: tpu_custom_call.1
= control target key start
LH: loop header
LB: loop body
LE: loop exit
PB: predicated region body
PF: predicated region fallthrough
CT: control target
= control target key end

     0   :  { %12 = vsyncpa [#allocation3], 0  ;;  %s1558_s0 = inlined_call_operand.hbm [shape: s8[128,128], index: 0, kind: input, shape index: {}]   ;;  %s1559_s1 = inlined_call_operand.vmem [shape: bf16[128,128], index: 1, kind: input, shape index: {}]   ;;  %s1560_s2 = inlined_call_operand.vmem [shape: f32[128,1], index: 2, kind: input, shape index: {}]   ;;  %s1561_s3 = inlined_call_operand.vmem [shape: bf16[128,128], index: 3, kind: input, shape index: {}]   ;;  %s1562_s4 = inlined_call_operand.vmem [shape: f32[1,128], index: 4, kind: input, shape index: {}]   ;;  %s1563_s5 = inlined_call_operand.hbm [shape: bf16[128,128], index: 5, kind: input, shape index: {}]   ;;  %s1564_s6 = inlined_call_operand.vmem [shape: f32[1,128], index: 6, kind: input, shape index: {}]   ;;  %s1565_s7 = inlined_call_operand.hbm [shape: f32[128,128], index: 7, kind: output, shape index: {}]  }
   0x1   :  { %13 = vsyncpa [#allocation6], 0 }
   0x2   :  { %14 = vsyncpa [#allocation4], 0  ;;  %s1220_s24 = smov [#allocation2]   ;;  %s1148_s28 = scalar_lea.hbm %s1558_s0, 512 }
   0x3   :  { %s20_s25 = sshll.u32 %s1220_s24, 4  ;;  %p1149_p0 = scmp.ne.s32.totalorder %s1558_s0, %s1148_s28  ;;  %s21_s25 = int_to_ptr.vmem [resolvable:$true] %s20_s25 }
   0x4   :  { %p1152_p1 = scmp.lt.u32.totalorder %s1148_s28, %s1558_s0 }
   0x6   :  { %p1154_p2 = pnand %p1152_p1, %p1149_p0 }
   0x8   :  { %1157 = shalt.err (!%p1154_p2)
}
   0x9   :  { %s1158_s10 = scalar_lea.vmem %s21_s25, 512  ;;  %p1163_p4 = scmp.lt.s32.totalorder %s21_s25, %s21_s25 }
   0xa   :  { %p1159_p3 = scmp.ne.s32.totalorder %s21_s25, %s1158_s10  ;;  %p1164_p5 = scmp.lt.s32.totalorder %s1158_s10, %s1158_s10 }
   0xc   :  { %p1165_p6 = por %p1164_p5, %p1163_p4 }
   0xe   :  { %p1166_p7 = pnand %p1165_p6, %p1159_p3 }
  0x10   :  { %1169 = shalt.err (!%p1166_p7)
}
  0x11   :  { %s1221_s11 = smov 128   ;;  %s1222_s12 = smov 8  }
  0x12   :  { %26 = dma.hbm_to_vmem [thread:$0]  %s1558_s0, 512, %s21_s25, [#allocation3], %s1221_s11, %s1221_s11, %s1222_s12  }
  0x13   :  { %s1223_s15 = smov [#allocation5]   ;;  %s1170_s19 = scalar_lea.hbm %s1563_s5, 1024 }
  0x14   :  { %s40_s16 = sshll.u32 %s1223_s15, 4  ;;  %p1171_p8 = scmp.ne.s32.totalorder %s1563_s5, %s1170_s19  ;;  %s41_s16 = int_to_ptr.vmem [resolvable:$true] %s40_s16 }
  0x15   :  { %p1174_p9 = scmp.lt.u32.totalorder %s1170_s19, %s1563_s5 }
  0x17   :  { %p1176_p10 = pnand %p1174_p9, %p1171_p8 }
  0x19   :  { %1179 = shalt.err (!%p1176_p10)
}
  0x1a   :  { %s1180_s24 = scalar_lea.vmem %s41_s16, 1024  ;;  %p1185_p12 = scmp.lt.s32.totalorder %s41_s16, %s41_s16 }
  0x1b   :  { %p1181_p11 = scmp.ne.s32.totalorder %s41_s16, %s1180_s24  ;;  %p1186_p13 = scmp.lt.s32.totalorder %s1180_s24, %s1180_s24 }
  0x1d   :  { %p1187_p0 = por %p1186_p13, %p1185_p12 }
  0x1f   :  { %p1188_p1 = pnand %p1187_p0, %p1181_p11 }
  0x21   :  { %1191 = shalt.err (!%p1188_p1)
}
  0x22   :  { %s1224_s0 = smov 64   ;;  %s1225_s25 = smov 4  }
  0x23   :  { %46 = dma.hbm_to_vmem [thread:$0]  %s1563_s5, 1024, %s41_s16, [#allocation6], %s1224_s0, %s1224_s0, %s1225_s25  }
  0x24   :  { %1214 = dma.done.wait [#allocation3], 512  }
  0x25   :  { %1215 = vsyncadd [#allocation3], 4294966784 }
  0x26   :  { %1216 = dma.done.wait [#allocation6], 1024  }
  0x27   :  { %1217 = vsyncadd [#allocation6], 4294966272  ;;  %v1226_v0 = vmov 0   ;;  %v1124_v1 = vld [vmem:[%s1559_s1] sm:$0xff]   ;;  %v1125_v2 = vld [vmem:[%s1559_s1 + $0x8] sm:$0xff]  }
  0x28   :  { %1122 = vset.pattern.permute.xlu0 %v1226_v0  ;;  %1123 = vset.pattern.permute.xlu1 %v1226_v0  ;;  %v1126_v3 = vld [vmem:[%s1559_s1 + $0x10] sm:$0xff]   ;;  %v1127_v4 = vld [vmem:[%s1559_s1 + $0x18] sm:$0xff]   ;;  %v1307_v5 = vld [vmem:[#allocation2] sm:$0xff] }
  0x29   :  { %986 = vmatprep.subr.bf16.mxu0 %v1124_v1  ;;  %v60_v6 = vunpack.c.l.s8.bf16 %v1307_v5  ;;  %v68_v7 = vld [vmem:[%s1560_s2] sm:$0xff]  ;;  %v70_v8 = vld [vmem:[%s1560_s2 + $0x10] sm:$0xff]  ;;  %v69_v9 = vld [vmem:[%s1560_s2 + $0x8] sm:$0xff]  ;;  %v61_v29 = vunpack.c.h.s8.bf16 %v1307_v5 }
  0x2a   :  { %987 = vmatpush3.bf16.msra.mxu0 %v1124_v1  ;;  %247 = vperm.xlu0 %1122, %v68_v7   ;;  %v71_v10 = vld [vmem:[%s1560_s2 + $0x18] sm:$0xff]  ;;  %v1128_v11 = vld [vmem:[%s1559_s1 + $0x20] sm:$0xff]   ;;  %v1129_v12 = vld [vmem:[%s1559_s1 + $0x28] sm:$0xff]  }
  0x2b   :  { %988 = vmatprep.subr.bf16.mxu0 %v1125_v2  ;;  %257 = vperm.xlu1 %1123, %v70_v8   ;;  %v72_v13 = vld [vmem:[%s1560_s2 + $0x20] sm:$0xff]  ;;  %v73_v14 = vld [vmem:[%s1560_s2 + $0x28] sm:$0xff]  ;;  %v74_v16 = vld [vmem:[%s1560_s2 + $0x30] sm:$0xff] }
  0x2c   :  { %1002 = vmatprep.mubr.bf16.mxu0 %v60_v6  ;;  %v1132_v15 = vld [vmem:[%s1561_s3] sm:$0xff]   ;;  %v75_v17 = vld [vmem:[%s1560_s2 + $0x38] sm:$0xff]  ;;  %v1133_v18 = vld [vmem:[%s1561_s3 + $0x8] sm:$0xff]  }
  0x2d   :  { %1018 = vmatprep.subr.bf16.mxu1 %v1132_v15  ;;  %v1130_v19 = vld [vmem:[%s1559_s1 + $0x30] sm:$0xff]   ;;  %v76_v20 = vld [vmem:[%s1560_s2 + $0x40] sm:$0xff]  ;;  %v77_v21 = vld [vmem:[%s1560_s2 + $0x48] sm:$0xff] }
  0x2e   :  { %989 = vmatpush3.bf16.msra.mxu0 %v1125_v2  ;;  %252 = vperm.xlu0 %1122, %v69_v9   ;;  %v1134_v22 = vld [vmem:[%s1561_s3 + $0x10] sm:$0xff]   ;;  %v1131_v23 = vld [vmem:[%s1559_s1 + $0x38] sm:$0xff]   ;;  %v1372_v27 = vld [vmem:[#allocation2 + $0x8] sm:$0xff] }
  0x2f   :  { %990 = vmatprep.subr.bf16.mxu0 %v1126_v3  ;;  %262 = vperm.xlu1 %1123, %v71_v10   ;;  %v1135_v24 = vld [vmem:[%s1561_s3 + $0x18] sm:$0xff]   ;;  %v78_v25 = vld [vmem:[%s1560_s2 + $0x50] sm:$0xff]  ;;  %v1136_v28 = vld [vmem:[%s1561_s3 + $0x20] sm:$0xff]   ;;  %v62_v30 = vunpack.c.l.s8.bf16 %v1372_v27  ;;  %v63_v37 = vunpack.c.h.s8.bf16 %v1372_v27 }
  0x30   :  { %1019 = vmatpush3.bf16.msra.mxu1 %v1132_v15  ;;  %v79_v26 = vld [vmem:[%s1560_s2 + $0x58] sm:$0xff]  ;;  %v80_v31 = vld [vmem:[%s1560_s2 + $0x60] sm:$0xff]  ;;  %v81_v32 = vld [vmem:[%s1560_s2 + $0x68] sm:$0xff] }
  0x31   :  { %1020 = vmatprep.subr.bf16.mxu1 %v1133_v18  ;;  %v1137_v33 = vld [vmem:[%s1561_s3 + $0x28] sm:$0xff]   ;;  %v82_v34 = vld [vmem:[%s1560_s2 + $0x70] sm:$0xff]  ;;  %v83_v36 = vld [vmem:[%s1560_s2 + $0x78] sm:$0xff] }
  0x32   :  { %991 = vmatpush3.bf16.msra.mxu0 %v1126_v3  ;;  %267 = vperm.xlu0 %1122, %v72_v13   ;;  %v1395_v35 = vld [vmem:[#allocation2 + $0x10] sm:$0xff]  ;;  %v1406_v39 = vld [vmem:[#allocation2 + $0x18] sm:$0xff]  ;;  %v1140_v45 = vld [vmem:[#allocation5] sm:$0xff]  }
  0x33   :  { %992 = vmatprep.subr.bf16.mxu0 %v1127_v4  ;;  %272 = vperm.xlu1 %1123, %v73_v14   ;;  %v64_v38 = vunpack.c.l.s8.bf16 %v1395_v35  ;;  %v65_v40 = vunpack.c.h.s8.bf16 %v1395_v35  ;;  %v66_v41 = vunpack.c.l.s8.bf16 %v1406_v39  ;;  %v67_v42 = vunpack.c.h.s8.bf16 %v1406_v39  ;;  %v1138_v43 = vld [vmem:[%s1561_s3 + $0x30] sm:$0xff]   ;;  %v1139_v44 = vld [vmem:[%s1561_s3 + $0x38] sm:$0xff]   ;;  %v1141_v46 = vld [vmem:[#allocation5 + $0x8] sm:$0xff]  }
  0x34   :  { %1021 = vmatpush3.bf16.msra.mxu1 %v1133_v18  ;;  %v1142_v47 = vld [vmem:[#allocation5 + $0x10] sm:$0xff]   ;;  %v1143_v48 = vld [vmem:[#allocation5 + $0x18] sm:$0xff]   ;;  %v1144_v49 = vld [vmem:[#allocation5 + $0x20] sm:$0xff]  }
  0x35   :  { %1022 = vmatprep.subr.bf16.mxu1 %v1134_v22  ;;  %v1145_v50 = vld [vmem:[#allocation5 + $0x28] sm:$0xff]  }
  0x36   :  { %993 = vmatpush3.bf16.msra.mxu0 %v1127_v4  ;;  %277 = vperm.xlu0 %1122, %v74_v16  }
  0x37   :  { %994 = vmatprep.subr.bf16.mxu0 %v1128_v11  ;;  %282 = vperm.xlu1 %1123, %v75_v17  }
  0x38   :  { %1023 = vmatpush3.bf16.msra.mxu1 %v1134_v22 }
  0x39   :  { %1024 = vmatprep.subr.bf16.mxu1 %v1135_v24 }
  0x3a   :  { %995 = vmatpush3.bf16.msra.mxu0 %v1128_v11  ;;  %287 = vperm.xlu0 %1122, %v76_v20  }
  0x3b   :  { %996 = vmatprep.subr.bf16.mxu0 %v1129_v12  ;;  %292 = vperm.xlu1 %1123, %v77_v21  }
  0x3c   :  { %1025 = vmatpush3.bf16.msra.mxu1 %v1135_v24 }
  0x3d   :  { %1026 = vmatprep.subr.bf16.mxu1 %v1136_v28 }
  0x3e   :  { %997 = vmatpush3.bf16.msra.mxu0 %v1129_v12  ;;  %297 = vperm.xlu0 %1122, %v78_v25  }
  0x3f   :  { %998 = vmatprep.subr.bf16.mxu0 %v1130_v19  ;;  %302 = vperm.xlu1 %1123, %v79_v26  }
  0x40   :  { %1027 = vmatpush3.bf16.msra.mxu1 %v1136_v28 }
  0x41   :  { %1028 = vmatprep.subr.bf16.mxu1 %v1137_v33 }
  0x42   :  { %999 = vmatpush3.bf16.msra.mxu0 %v1130_v19  ;;  %307 = vperm.xlu0 %1122, %v80_v31  }
  0x43   :  { %1000 = vmatprep.subr.bf16.mxu0 %v1131_v23  ;;  %312 = vperm.xlu1 %1123, %v81_v32  }
  0x44   :  { %1029 = vmatpush3.bf16.msra.mxu1 %v1137_v33 }
  0x45   :  { %1030 = vmatprep.subr.bf16.mxu1 %v1138_v43 }
  0x46   :  { %1001 = vmatpush3.bf16.msra.mxu0 %v1131_v23  ;;  %317 = vperm.xlu0 %1122, %v82_v34  }
  0x47   :  { %322 = vperm.xlu1 %1123, %v83_v36   ;;  %1050 = vmatprep.subr.bf16.mxu0 %v1140_v45 }
  0x48   :  { %1031 = vmatpush3.bf16.msra.mxu1 %v1138_v43 }
  0x49   :  { %1003 = vmatmul.mubr.bf16.vlgmr.msra.gmra.mrb[0].mxu0 %v61_v29  ;;  %1032 = vmatprep.subr.bf16.mxu1 %v1139_v44 }
  0x4a   :  { %1006 = vmatprep.mubr.bf16.mxu0 %v62_v30  ;;  %1051 = vmatpush3.bf16.msra.mxu0 %v1140_v45 }
  0x4b   :  { %1052 = vmatprep.subr.bf16.mxu0 %v1141_v46 }
  0x4c   :  { %1033 = vmatpush3.bf16.msra.mxu1 %v1139_v44 }
  0x4e   :  { %1053 = vmatpush3.bf16.msra.mxu0 %v1141_v46 }
  0x4f   :  { %1054 = vmatprep.subr.bf16.mxu0 %v1142_v47 }
  0x51   :  { %1007 = vmatmul.mubr.bf16.gmra.mrb[4].mxu0 %v63_v37 }
  0x52   :  { %1010 = vmatprep.mubr.bf16.mxu0 %v64_v38  ;;  %1055 = vmatpush3.bf16.msra.mxu0 %v1142_v47 }
  0x53   :  { %1056 = vmatprep.subr.bf16.mxu0 %v1143_v48 }
  0x56   :  { %1057 = vmatpush3.bf16.msra.mxu0 %v1143_v48 }
  0x57   :  { %1058 = vmatprep.subr.bf16.mxu0 %v1144_v49 }
  0x59   :  { %1011 = vmatmul.mubr.bf16.gmra.mrb[8].mxu0 %v65_v40 }
  0x5a   :  { %1014 = vmatprep.mubr.bf16.mxu0 %v66_v41  ;;  %1059 = vmatpush3.bf16.msra.mxu0 %v1144_v49 }
  0x5b   :  { %1060 = vmatprep.subr.bf16.mxu0 %v1145_v50 }
  0x5e   :  { %1061 = vmatpush3.bf16.msra.mxu0 %v1145_v50 }
  0x61   :  { %1015 = vmatmul.mubr.bf16.gmra.mrb[12].mxu0 %v67_v42 }
  0xa9   :  { %v1423_v51 = vpop.permute.xlu0 %247 }
  0xaa   :  { %v1425_v52 = vpop.permute.xlu1 %257 }
  0xad   :  { %v1427_v53 = vpop.permute.xlu0 %252 }
  0xae   :  { %v1429_v54 = vpop.permute.xlu1 %262 }
  0xb1   :  { %v1431_v55 = vpop.permute.xlu0 %267 }
  0xb2   :  { %v1433_v56 = vpop.permute.xlu1 %272 }
  0xb5   :  { %v1435_v58 = vpop.permute.xlu0 %277 }
  0xb6   :  { %v1437_v60 = vpop.permute.xlu1 %282 }
  0xb9   :  { %v1443_v7 = vpop.permute.xlu0 %287 }
  0xba   :  { %v1445_v8 = vpop.permute.xlu1 %292 }
  0xbd   :  { %v1451_v17 = vpop.permute.xlu0 %297 }
  0xbe   :  { %v1453_v19 = vpop.permute.xlu1 %302 }
  0xc1   :  { %v1455_v24 = vpop.permute.xlu0 %307 }
  0xc2   :  { %v1459_v31 = vpop.permute.xlu1 %312 }
  0xc5   :  { %v1463_v44 = vpop.permute.xlu0 %317 }
  0xc6   :  { %v1465_v46 = vpop.permute.xlu1 %322 }
 0x11c   :  { %v1004_v57 = vpop.f32.mrb[0].mxu0 }
 0x11d   :  { %v182_v59 = vpop.f32.mrb[1].mxu0  ;;  %v327_v62 = vmul.f32 %v1004_v57, %v1425_v52 }
 0x11e   :  { %v1005_v61 = vpop.f32.mrb[2].mxu0  ;;  %v325_v1 = vmul.f32 %v1423_v51, %v182_v59 }
 0x11f   :  { %v328_v63 = vmul.f32 %v1005_v61, %v1429_v54  ;;  %v185_v0 = vpop.f32.mrb[3].mxu0 }
 0x120   :  { %v326_v2 = vmul.f32 %v1427_v53, %v185_v0  ;;  %v1147_v0 = vld [vmem:[#allocation5 + $0x38] sm:$0xff]  }
 0x121   :  { %v342_v3 = vpack.c.bf16 %v328_v63, %v327_v62  ;;  %v1146_v63 = vld [vmem:[#allocation5 + $0x30] sm:$0xff]  }
 0x122   :  { %v341_v4 = vpack.c.bf16 %v326_v2, %v325_v1  ;;  %1062 = vmatprep.subr.bf16.mxu0 %v1146_v63  ;;  %v904_v1 = vld [vmem:[%s1562_s4] ss:$0 sm:$0xff] }
 0x123   :  { %1063 = vmatpush3.bf16.msra.mxu0 %v1146_v63 }
 0x124   :  { %v1008_v9 = vpop.f32.mrb[4].mxu0  ;;  %1034 = vmatprep.mubr.bf16.mxu1 %v341_v4  ;;  %1064 = vmatprep.subr.bf16.mxu0 %v1147_v0 }
 0x125   :  { %v198_v10 = vpop.f32.mrb[5].mxu0  ;;  %1035 = vmatmul.mubr.bf16.vlgmr.msra.gmra.mrb[0].mxu1 %v342_v3  ;;  %v331_v12 = vmul.f32 %v1008_v9, %v1435_v58 }
 0x126   :  { %v1009_v11 = vpop.f32.mrb[6].mxu0  ;;  %v329_v15 = vmul.f32 %v1431_v55, %v198_v10 }
 0x127   :  { %v332_v13 = vmul.f32 %v1009_v11, %v1437_v60  ;;  %v201_v14 = vpop.f32.mrb[7].mxu0  ;;  %1065 = vmatpush3.bf16.msra.mxu0 %v1147_v0 }
 0x128   :  { %v330_v16 = vmul.f32 %v1433_v56, %v201_v14 }
 0x129   :  { %v344_v18 = vpack.c.bf16 %v332_v13, %v331_v12 }
 0x12a   :  { %v343_v20 = vpack.c.bf16 %v330_v16, %v329_v15 }
 0x12c   :  { %v1012_v21 = vpop.f32.mrb[8].mxu0  ;;  %1038 = vmatprep.mubr.bf16.mxu1 %v343_v20 }
 0x12d   :  { %v214_v22 = vpop.f32.mrb[9].mxu0  ;;  %1039 = vmatmul.mubr.bf16.gmra.mrb[4].mxu1 %v344_v18  ;;  %v335_v25 = vmul.f32 %v1012_v21, %v1451_v17 }
 0x12e   :  { %v1013_v23 = vpop.f32.mrb[10].mxu0  ;;  %v333_v32 = vmul.f32 %v1443_v7, %v214_v22 }
 0x12f   :  { %v336_v26 = vmul.f32 %v1013_v23, %v1453_v19  ;;  %v217_v28 = vpop.f32.mrb[11].mxu0 }
 0x130   :  { %v334_v33 = vmul.f32 %v1445_v8, %v217_v28 }
 0x131   :  { %v346_v34 = vpack.c.bf16 %v336_v26, %v335_v25 }
 0x132   :  { %v345_v36 = vpack.c.bf16 %v334_v33, %v333_v32 }
 0x134   :  { %v1016_v43 = vpop.f32.mrb[12].mxu0  ;;  %1042 = vmatprep.mubr.bf16.mxu1 %v345_v36 }
 0x135   :  { %v230_v45 = vpop.f32.mrb[13].mxu0  ;;  %1043 = vmatmul.mubr.bf16.gmra.mrb[8].mxu1 %v346_v34  ;;  %v339_v48 = vmul.f32 %v1016_v43, %v1463_v44 }
 0x136   :  { %v1017_v47 = vpop.f32.mrb[14].mxu0  ;;  %v337_v57 = vmul.f32 %v1455_v24, %v230_v45 }
 0x137   :  { %v340_v49 = vmul.f32 %v1017_v47, %v1465_v46  ;;  %v233_v50 = vpop.f32.mrb[15].mxu0 }
 0x138   :  { %v338_v59 = vmul.f32 %v1459_v31, %v233_v50 }
 0x139   :  { %v348_v61 = vpack.c.bf16 %v340_v49, %v339_v48 }
 0x13a   :  { %v347_v62 = vpack.c.bf16 %v338_v59, %v337_v57 }
 0x13c   :  { %1046 = vmatprep.mubr.bf16.mxu1 %v347_v62 }
 0x13d   :  { %1047 = vmatmul.mubr.bf16.gmra.mrb[12].mxu1 %v348_v61 }
 0x13e   :  { %1098 = vmatprep.mubr.bf16.mxu1 %v60_v6 }
 0x1f8   :  { %v1036_v2 = vpop.f32.mrb[0].mxu1 }
 0x1f9   :  { %v463_v3 = vadd.f32 %v1036_v2, %v904_v1  ;;  %v454_v4 = vpop.f32.mrb[1].mxu1 }
 0x1fa   :  { %v455_v9 = vadd.f32 %v904_v1, %v454_v4  ;;  %v1037_v10 = vpop.f32.mrb[2].mxu1 }
 0x1fb   :  { %v466_v11 = vadd.f32 %v1037_v10, %v904_v1  ;;  %v457_v12 = vpop.f32.mrb[3].mxu1  ;;  %v519_v14 = vmax.f32 %v463_v3, 0.0 }
 0x1fc   :  { %v458_v13 = vadd.f32 %v904_v1, %v457_v12  ;;  %v517_v15 = vmax.f32 %v455_v9, 0.0 }
 0x1fd   :  { %v520_v6 = vmax.f32 %v466_v11, 0.0 }
 0x1fe   :  { %v518_v16 = vmax.f32 %v458_v13, 0.0 }
 0x1ff   :  { %v534_v18 = vpack.c.bf16 %v520_v6, %v519_v14 }
 0x200   :  { %v533_v20 = vpack.c.bf16 %v518_v16, %v517_v15  ;;  %v1040_v21 = vpop.f32.mrb[4].mxu1 }
 0x201   :  { %v479_v22 = vadd.f32 %v1040_v21, %v904_v1  ;;  %v470_v23 = vpop.f32.mrb[5].mxu1 }
 0x202   :  { %v471_v25 = vadd.f32 %v904_v1, %v470_v23  ;;  %v1041_v26 = vpop.f32.mrb[6].mxu1  ;;  %1066 = vmatprep.mubr.bf16.mxu0 %v533_v20 }
 0x203   :  { %v482_v28 = vadd.f32 %v1041_v26, %v904_v1  ;;  %v473_v32 = vpop.f32.mrb[7].mxu1  ;;  %1067 = vmatmul.mubr.bf16.vlgmr.msra.gmra.mrb[16].mxu0 %v534_v18  ;;  %v523_v34 = vmax.f32 %v479_v22, 0.0 }
 0x204   :  { %v474_v33 = vadd.f32 %v904_v1, %v473_v32  ;;  %v521_v43 = vmax.f32 %v471_v25, 0.0 }
 0x205   :  { %v524_v36 = vmax.f32 %v482_v28, 0.0 }
 0x206   :  { %v522_v45 = vmax.f32 %v474_v33, 0.0 }
 0x207   :  { %v536_v47 = vpack.c.bf16 %v524_v36, %v523_v34 }
 0x208   :  { %v535_v48 = vpack.c.bf16 %v522_v45, %v521_v43  ;;  %v1044_v49 = vpop.f32.mrb[8].mxu1 }
 0x209   :  { %v495_v50 = vadd.f32 %v1044_v49, %v904_v1  ;;  %v486_v57 = vpop.f32.mrb[9].mxu1 }
 0x20a   :  { %v487_v59 = vadd.f32 %v904_v1, %v486_v57  ;;  %v1045_v61 = vpop.f32.mrb[10].mxu1  ;;  %1070 = vmatprep.mubr.bf16.mxu0 %v535_v48 }
 0x20b   :  { %v498_v62 = vadd.f32 %v1045_v61, %v904_v1  ;;  %v489_v63 = vpop.f32.mrb[11].mxu1  ;;  %1071 = vmatmul.mubr.bf16.gmra.mrb[20].mxu0 %v536_v47  ;;  %v527_v2 = vmax.f32 %v495_v50, 0.0 }
 0x20c   :  { %v490_v0 = vadd.f32 %v904_v1, %v489_v63  ;;  %v525_v4 = vmax.f32 %v487_v59, 0.0 }
 0x20d   :  { %v528_v3 = vmax.f32 %v498_v62, 0.0 }
 0x20e   :  { %v526_v9 = vmax.f32 %v490_v0, 0.0 }
 0x20f   :  { %v538_v10 = vpack.c.bf16 %v528_v3, %v527_v2 }
 0x210   :  { %v537_v11 = vpack.c.bf16 %v526_v9, %v525_v4  ;;  %v1048_v12 = vpop.f32.mrb[12].mxu1 }
 0x211   :  { %v511_v13 = vadd.f32 %v1048_v12, %v904_v1  ;;  %v502_v14 = vpop.f32.mrb[13].mxu1 }
 0x212   :  { %v503_v6 = vadd.f32 %v904_v1, %v502_v14  ;;  %v1049_v15 = vpop.f32.mrb[14].mxu1  ;;  %1074 = vmatprep.mubr.bf16.mxu0 %v537_v11 }
 0x213   :  { %v514_v16 = vadd.f32 %v1049_v15, %v904_v1  ;;  %v505_v18 = vpop.f32.mrb[15].mxu1  ;;  %1075 = vmatmul.mubr.bf16.gmra.mrb[24].mxu0 %v538_v10  ;;  %v531_v21 = vmax.f32 %v511_v13, 0.0 }
 0x214   :  { %v506_v20 = vadd.f32 %v904_v1, %v505_v18  ;;  %v529_v23 = vmax.f32 %v503_v6, 0.0 }
 0x215   :  { %v532_v22 = vmax.f32 %v514_v16, 0.0 }
 0x216   :  { %v530_v25 = vmax.f32 %v506_v20, 0.0 }
 0x217   :  { %v540_v26 = vpack.c.bf16 %v532_v22, %v531_v21 }
 0x218   :  { %v539_v28 = vpack.c.bf16 %v530_v25, %v529_v23 }
 0x21a   :  { %1078 = vmatprep.mubr.bf16.mxu0 %v539_v28 }
 0x21b   :  { %1079 = vmatmul.mubr.bf16.gmra.mrb[28].mxu0 %v540_v26 }
 0x2d6   :  { %v1068_v32 = vpop.f32.mrb[16].mxu0 }
 0x2d7   :  { %v639_v33 = vpop.f32.mrb[17].mxu0  ;;  %v704_v36 = vmul.f32 %v1068_v32, %v1425_v52 }
 0x2d8   :  { %v1069_v34 = vpop.f32.mrb[18].mxu0  ;;  %v702_v47 = vmul.f32 %v639_v33, %v1423_v51 }
 0x2d9   :  { %v705_v43 = vmul.f32 %v1069_v34, %v1429_v54  ;;  %v642_v45 = vpop.f32.mrb[19].mxu0 }
 0x2da   :  { %v703_v1 = vmul.f32 %v642_v45, %v1427_v53 }
 0x2db   :  { %v719_v48 = vpack.c.bf16 %v705_v43, %v704_v36 }
 0x2dc   :  { %v718_v49 = vpack.c.bf16 %v703_v1, %v702_v47 }
 0x2de   :  { %v1072_v50 = vpop.f32.mrb[20].mxu0  ;;  %1082 = vmatprep.subr.bf16.mxu1 %v718_v49 }
 0x2df   :  { %v655_v57 = vpop.f32.mrb[21].mxu0  ;;  %1083 = vmatpush3.bf16.msra.mxu1 %v718_v49  ;;  %v708_v61 = vmul.f32 %v1072_v50, %v1435_v58 }
 0x2e0   :  { %v1073_v59 = vpop.f32.mrb[22].mxu0  ;;  %1084 = vmatprep.subr.bf16.mxu1 %v719_v48  ;;  %v706_v0 = vmul.f32 %v655_v57, %v1431_v55 }
 0x2e1   :  { %v709_v62 = vmul.f32 %v1073_v59, %v1437_v60  ;;  %v658_v63 = vpop.f32.mrb[23].mxu0 }
 0x2e2   :  { %v707_v2 = vmul.f32 %v658_v63, %v1433_v56 }
 0x2e3   :  { %v721_v3 = vpack.c.bf16 %v709_v62, %v708_v61  ;;  %1085 = vmatpush3.bf16.msra.mxu1 %v719_v48 }
 0x2e4   :  { %v720_v4 = vpack.c.bf16 %v707_v2, %v706_v0 }
 0x2e6   :  { %v1076_v9 = vpop.f32.mrb[24].mxu0  ;;  %1086 = vmatprep.subr.bf16.mxu1 %v720_v4 }
 0x2e7   :  { %v671_v10 = vpop.f32.mrb[25].mxu0  ;;  %1087 = vmatpush3.bf16.msra.mxu1 %v720_v4  ;;  %v712_v12 = vmul.f32 %v1076_v9, %v1451_v17 }
 0x2e8   :  { %v1077_v11 = vpop.f32.mrb[26].mxu0  ;;  %1088 = vmatprep.subr.bf16.mxu1 %v721_v3  ;;  %v710_v6 = vmul.f32 %v671_v10, %v1443_v7 }
 0x2e9   :  { %v713_v13 = vmul.f32 %v1077_v11, %v1453_v19  ;;  %v674_v14 = vpop.f32.mrb[27].mxu0 }
 0x2ea   :  { %v711_v15 = vmul.f32 %v674_v14, %v1445_v8 }
 0x2eb   :  { %v723_v16 = vpack.c.bf16 %v713_v13, %v712_v12  ;;  %1089 = vmatpush3.bf16.msra.mxu1 %v721_v3 }
 0x2ec   :  { %v722_v18 = vpack.c.bf16 %v711_v15, %v710_v6 }
 0x2ee   :  { %v1080_v20 = vpop.f32.mrb[28].mxu0  ;;  %1090 = vmatprep.subr.bf16.mxu1 %v722_v18 }
 0x2ef   :  { %v687_v21 = vpop.f32.mrb[29].mxu0  ;;  %1091 = vmatpush3.bf16.msra.mxu1 %v722_v18  ;;  %v716_v23 = vmul.f32 %v1080_v20, %v1463_v44 }
 0x2f0   :  { %v1081_v22 = vpop.f32.mrb[30].mxu0  ;;  %1092 = vmatprep.subr.bf16.mxu1 %v723_v16  ;;  %v714_v28 = vmul.f32 %v687_v21, %v1455_v24 }
 0x2f1   :  { %v717_v25 = vmul.f32 %v1081_v22, %v1465_v46  ;;  %v690_v26 = vpop.f32.mrb[31].mxu0 }
 0x2f2   :  { %v715_v32 = vmul.f32 %v690_v26, %v1459_v31 }
 0x2f3   :  { %v725_v33 = vpack.c.bf16 %v717_v25, %v716_v23  ;;  %1093 = vmatpush3.bf16.msra.mxu1 %v723_v16 }
 0x2f4   :  { %v724_v34 = vpack.c.bf16 %v715_v32, %v714_v28 }
 0x2f6   :  { %1094 = vmatprep.subr.bf16.mxu1 %v724_v34 }
 0x2f7   :  { %1095 = vmatpush3.bf16.msra.mxu1 %v724_v34 }
 0x2f8   :  { %1096 = vmatprep.subr.bf16.mxu1 %v725_v33 }
 0x2fb   :  { %1097 = vmatpush3.bf16.msra.mxu1 %v725_v33 }
 0x2fe   :  { %1099 = vmatmul.mubr.bf16.vlgmr.msra.gmra.mrb[16].mxu1 %v61_v29  ;;  %v1509_v29 = vld [vmem:[%s1564_s6] ss:$0 sm:$0xff]  ;;  %s1227_s6 = smov [#allocation7]  }
 0x2ff   :  { %1102 = vmatprep.mubr.bf16.mxu1 %v62_v30  ;;  %s883_s24 = sshll.u32 %s1227_s6, 4  ;;  %s884_s24 = int_to_ptr.vmem [resolvable:$true] %s883_s24 }
 0x300   :  { %s1192_s0 = scalar_lea.vmem %s884_s24, 2048  ;;  %p1197_p3 = scmp.lt.s32.totalorder %s884_s24, %s884_s24 }
 0x301   :  { %p1193_p2 = scmp.ne.s32.totalorder %s884_s24, %s1192_s0  ;;  %p1198_p4 = scmp.lt.s32.totalorder %s1192_s0, %s1192_s0 }
 0x303   :  { %p1199_p5 = por %p1198_p4, %p1197_p3 }
 0x305   :  { %p1200_p6 = pnand %p1199_p5, %p1193_p2 }
 0x306   :  { %1103 = vmatmul.mubr.bf16.gmra.mrb[20].mxu1 %v63_v37 }
 0x307   :  { %1106 = vmatprep.mubr.bf16.mxu1 %v64_v38 }
 0x30e   :  { %1107 = vmatmul.mubr.bf16.gmra.mrb[24].mxu1 %v65_v40 }
 0x30f   :  { %1110 = vmatprep.mubr.bf16.mxu1 %v66_v41 }
 0x316   :  { %1111 = vmatmul.mubr.bf16.gmra.mrb[28].mxu1 %v67_v42 }
 0x3d1   :  { %v1100_v5 = vpop.f32.mrb[16].mxu1 }
 0x3d2   :  { %v825_v27 = vmul.f32 %v1100_v5, %v1425_v52  ;;  %v760_v30 = vpop.f32.mrb[17].mxu1 }
 0x3d3   :  { %v823_v37 = vmul.f32 %v760_v30, %v1423_v51  ;;  %v1101_v38 = vpop.f32.mrb[18].mxu1 }
 0x3d4   :  { %v848_v35 = vadd.f32 %v1509_v29, %v825_v27  ;;  %v826_v40 = vmul.f32 %v1101_v38, %v1429_v54  ;;  %v763_v41 = vpop.f32.mrb[19].mxu1 }
 0x3d5   :  { %v846_v39 = vadd.f32 %v1509_v29, %v823_v37  ;;  %v824_v42 = vmul.f32 %v763_v41, %v1427_v53 }
 0x3d6   :  { %864 = vst [vmem:[#allocation7 + $0x10] sm:$0xff] %v848_v35  ;;  %v849_v36 = vadd.f32 %v1509_v29, %v826_v40 }
 0x3d7   :  { %862 = vst [vmem:[#allocation7] sm:$0xff] %v846_v39  ;;  %v847_v43 = vadd.f32 %v1509_v29, %v824_v42 }
 0x3d8   :  { %865 = vst [vmem:[#allocation7 + $0x18] sm:$0xff] %v849_v36 }
 0x3d9   :  { %863 = vst [vmem:[#allocation7 + $0x8] sm:$0xff] %v847_v43  ;;  %v1104_v52 = vpop.f32.mrb[20].mxu1 }
 0x3da   :  { %v829_v51 = vmul.f32 %v1104_v52, %v1435_v58  ;;  %v776_v45 = vpop.f32.mrb[21].mxu1 }
 0x3db   :  { %v827_v47 = vmul.f32 %v776_v45, %v1431_v55  ;;  %v1105_v54 = vpop.f32.mrb[22].mxu1 }
 0x3dc   :  { %v852_v1 = vadd.f32 %v1509_v29, %v829_v51  ;;  %v830_v48 = vmul.f32 %v1105_v54, %v1437_v60  ;;  %v779_v53 = vpop.f32.mrb[23].mxu1 }
 0x3dd   :  { %v850_v49 = vadd.f32 %v1509_v29, %v827_v47  ;;  %v828_v50 = vmul.f32 %v779_v53, %v1433_v56 }
 0x3de   :  { %868 = vst [vmem:[#allocation7 + $0x30] sm:$0xff] %v852_v1  ;;  %v853_v57 = vadd.f32 %v1509_v29, %v830_v48 }
 0x3df   :  { %866 = vst [vmem:[#allocation7 + $0x20] sm:$0xff] %v850_v49  ;;  %v851_v59 = vadd.f32 %v1509_v29, %v828_v50 }
 0x3e0   :  { %869 = vst [vmem:[#allocation7 + $0x38] sm:$0xff] %v853_v57 }
 0x3e1   :  { %867 = vst [vmem:[#allocation7 + $0x28] sm:$0xff] %v851_v59  ;;  %v1108_v58 = vpop.f32.mrb[24].mxu1 }
 0x3e2   :  { %v833_v55 = vmul.f32 %v1108_v58, %v1451_v17  ;;  %v792_v61 = vpop.f32.mrb[25].mxu1 }
 0x3e3   :  { %v831_v62 = vmul.f32 %v792_v61, %v1443_v7  ;;  %v1109_v60 = vpop.f32.mrb[26].mxu1 }
 0x3e4   :  { %v856_v63 = vadd.f32 %v1509_v29, %v833_v55  ;;  %v834_v0 = vmul.f32 %v1109_v60, %v1453_v19  ;;  %v795_v56 = vpop.f32.mrb[27].mxu1 }
 0x3e5   :  { %v854_v2 = vadd.f32 %v1509_v29, %v831_v62  ;;  %v832_v3 = vmul.f32 %v795_v56, %v1445_v8 }
 0x3e6   :  { %872 = vst [vmem:[#allocation7 + $0x50] sm:$0xff] %v856_v63  ;;  %v857_v4 = vadd.f32 %v1509_v29, %v834_v0 }
 0x3e7   :  { %870 = vst [vmem:[#allocation7 + $0x40] sm:$0xff] %v854_v2  ;;  %v855_v9 = vadd.f32 %v1509_v29, %v832_v3 }
 0x3e8   :  { %873 = vst [vmem:[#allocation7 + $0x58] sm:$0xff] %v857_v4 }
 0x3e9   :  { %871 = vst [vmem:[#allocation7 + $0x48] sm:$0xff] %v855_v9  ;;  %v1112_v17 = vpop.f32.mrb[28].mxu1 }
 0x3ea   :  { %v837_v7 = vmul.f32 %v1112_v17, %v1463_v44  ;;  %v808_v10 = vpop.f32.mrb[29].mxu1 }
 0x3eb   :  { %v835_v11 = vmul.f32 %v808_v10, %v1455_v24  ;;  %v1113_v19 = vpop.f32.mrb[30].mxu1 }
 0x3ec   :  { %v860_v12 = vadd.f32 %v1509_v29, %v837_v7  ;;  %v838_v13 = vmul.f32 %v1113_v19, %v1465_v46  ;;  %v811_v8 = vpop.f32.mrb[31].mxu1 }
 0x3ed   :  { %v858_v14 = vadd.f32 %v1509_v29, %v835_v11  ;;  %v836_v6 = vmul.f32 %v811_v8, %v1459_v31 }
 0x3ee   :  { %876 = vst [vmem:[#allocation7 + $0x70] sm:$0xff] %v860_v12  ;;  %v861_v15 = vadd.f32 %v1509_v29, %v838_v13 }
 0x3ef   :  { %874 = vst [vmem:[#allocation7 + $0x60] sm:$0xff] %v858_v14  ;;  %v859_v44 = vadd.f32 %v1509_v29, %v836_v6 }
 0x3f0   :  { %877 = vst [vmem:[#allocation7 + $0x78] sm:$0xff] %v861_v15 }
 0x3f1   :  { %875 = vst [vmem:[#allocation7 + $0x68] sm:$0xff] %v859_v44 }
 0x3f2   :  { %1203 = shalt.err (!%p1200_p6)
}
 0x3f3   :  { %s1204_s27 = scalar_lea.hbm %s1565_s7, 2048 }
 0x3f4   :  { %p1205_p7 = scmp.ne.s32.totalorder %s1565_s7, %s1204_s27  ;;  %p1208_p8 = scmp.lt.u32.totalorder %s1204_s27, %s1565_s7 }
 0x3f6   :  { %p1210_p9 = pnand %p1208_p8, %p1205_p7 }
 0x3f8   :  { %1213 = shalt.err (!%p1210_p9)
}
 0x3f9   :  { %889 = dma.vmem_to_hbm [thread:$0]  %s884_s24, 2048, %s1565_s7, [#allocation4], %s1221_s11, %s1221_s11, %s1222_s12  }
 0x3fa   :  { %1218 = dma.done.wait [#allocation4], 2048  }
 0x3fb   :  { %1219 = vsyncadd [#allocation4], 4294965248 }
 0x3fc   :  { %893 = vsyncpa [#allocation3], 1 }
 0x3fd   :  { %894 = vsyncpa [#allocation6], 1 }
 0x3fe   :  { %895 = vsyncpa [#allocation4], 1 }

</bundles_post_ra>
